<compile_context>
chip_gen: v7x
topology: tpu7x:2x2x1
jax: 0.10.0
libtpu: 0.0.40
codegen_flags: <defaults>
</compile_context>

<pallas_src>
import functools

import jax
import jax.numpy as jnp
from jax import lax
from jax.experimental import pallas as pl
from jax.experimental.pallas import tpu as pltpu

LANES = 128
SUBLANES = 8
TARGET_BLOCK_BYTES = 8 * 1024 * 1024    # ~8 MiB of input streamed per grid step
VMEM_LIMIT_BYTES = 28 * 1024 * 1024     # 2 x 8 MiB double buffer + headroom


def _round_up(x, m):
    return ((x + m - 1) // m) * m


def _num_tensorcore_splits():
    # v7x has 2 TensorCores per chip; v5e/v6e have 1.  Default to 1 (always correct).
    try:
        kind = jax.devices()[0].device_kind.lower()
    except Exception:
        return 1
    return 2 if "v7" in kind else 1


def _entropy_kernel(x_ref, out_ref, *, epsilon, block_rows, nb_total,
                    nb_per_split, tail_full_rows, tail_lanes):
    # x_ref:   (block_rows, LANES) VMEM tile of the flattened input
    # out_ref: (SUBLANES, LANES) f32 per-split partial sums; VMEM-resident
    #          across the reduction axis (its index_map is constant in i), so
    #          it doubles as the accumulator.
    c = pl.program_id(0)          # parallel split (TensorCore) index
    i = pl.program_id(1)          # reduction step within this split

    @pl.when(i == 0)
    def _():
        out_ref[...] = jnp.zeros_like(out_ref)

    logical_block = c * nb_per_split + i

    def partial_sum(contrib):
        # Per-(sublane, lane) partial sums: VPU adds only in the hot loop; the
        # single cross-lane reduce happens on the tiny partials in the wrapper.
        return jnp.sum(
            contrib.reshape(block_rows // SUBLANES, SUBLANES, LANES), axis=0)

    # Hot path: every block except the last logical one is fully valid, so no
    # per-element iota/compare/select (keeps the 4-slot VALU off the critical
    # path; the kernel stays HBM-bound).
    @pl.when(logical_block < nb_total - 1)
    def _():
        p = x_ref[...].astype(jnp.float32) + jnp.float32(epsilon)
        out_ref[...] += partial_sum(p * jnp.log(p))

    # Tail block only: mask lane padding, the ragged last row, and Pallas row
    # padding using *local* row/lane indices (no flat element index -> no
    # int32 overflow for huge inputs).  The select also discards any NaN/-inf
    # produced by log() of uninitialized block padding.
    @pl.when(logical_block == nb_total - 1)
    def _():
        p = x_ref[...].astype(jnp.float32) + jnp.float32(epsilon)
        contrib = p * jnp.log(p)
        row = lax.broadcasted_iota(jnp.int32, contrib.shape, 0)
        lane = lax.broadcasted_iota(jnp.int32, contrib.shape, 1)
        valid = (row < tail_full_rows) | (
            (row == tail_full_rows) & (lane < tail_lanes))
        out_ref[...] += partial_sum(jnp.where(valid, contrib, 0.0))

    # logical_block > nb_total - 1: clamped out-of-range block of a short
    # split; it contributes nothing (accumulation skipped entirely).


def entropy_loss(prob, epsilon=1e-8):
    """Pallas TPU implementation of EntropyLoss.forward. Returns an f32 scalar."""
    n_true = int(prob.size)
    itemsize = jnp.dtype(prob.dtype).itemsize

    flat = prob.reshape(-1)           # keep original dtype; cast in-kernel
    rem = n_true % LANES
    if rem:
        # Rare ragged-lane case: pad up to a multiple of 128.  Pad values are
        # masked in the tail block.
        flat = jnp.pad(flat, (0, LANES - rem))
    x2d = flat.reshape(-1, LANES)
    n_rows = x2d.shape[0]

    # Keep ~TARGET_BLOCK_BYTES of HBM traffic per grid step regardless of the
    # input dtype; rows stay a multiple of the packed-sublane tile
    # (8 for f32, 16 for bf16, 32 for int8).
    row_multiple = SUBLANES * max(1, 4 // itemsize)
    cap_rows = max(row_multiple,
                   (TARGET_BLOCK_BYTES // (LANES * itemsize))
                   // row_multiple * row_multiple)
    block_rows = min(cap_rows, _round_up(n_rows, row_multiple))

    nb_total = pl.cdiv(n_rows, block_rows)
    num_splits = min(_num_tensorcore_splits(), nb_total)
    nb_per_split = pl.cdiv(nb_total, num_splits)

    # Tail-block geometry (static Python ints; all strictly < block_rows+1).
    full_rows = n_true // LANES
    tail_lanes = n_true % LANES
    tail_full_rows = full_rows - (nb_total - 1) * block_rows

    def in_map(c, i):
        # Clamp so a split whose range runs past the last block just re-reads
        # the last real block (its contribution is skipped in-kernel).
        return (jnp.minimum(c * nb_per_split + i, nb_total - 1), 0)

    kernel = functools.partial(
        _entropy_kernel, epsilon=float(epsilon), block_rows=block_rows,
        nb_total=nb_total, nb_per_split=nb_per_split,
        tail_full_rows=tail_full_rows, tail_lanes=tail_lanes)

    partials = pl.pallas_call(
        kernel,
        out_shape=jax.ShapeDtypeStruct((num_splits * SUBLANES, LANES),
                                       jnp.float32),
        grid_spec=pltpu.PrefetchScalarGridSpec(
            num_scalar_prefetch=0,
            grid=(num_splits, nb_per_split),
            in_specs=[pl.BlockSpec((block_rows, LANES), in_map)],
            out_specs=pl.BlockSpec((SUBLANES, LANES), lambda c, i: (c, 0)),
        ),
        compiler_params=pltpu.CompilerParams(
            dimension_semantics=("parallel", "arbitrary"),
            vmem_limit_bytes=VMEM_LIMIT_BYTES),
    )(x2d)

    # Single tiny cross-lane reduce + normalize outside the kernel.
    return -jnp.sum(partials) / jnp.float32(n_true)


if __name__ == "__main__":
    key = jax.random.PRNGKey(0)
    # Small probability-like input consistent with NCHW usage: (2, 4, 16, 16)
    logits = jax.random.normal(key, (2, 4, 16, 16), dtype=jnp.float32)
    prob = jax.nn.softmax(logits, axis=1)  # valid probabilities over channels

    result = entropy_loss(prob, epsilon=1e-8)
    result = jax.block_until_ready(result)

    # Reference check in plain JAX (same math as the PyTorch module).
    p = prob.astype(jnp.float32) + 1e-8
    ref = -jnp.mean(p * jnp.log(p))
    assert jnp.allclose(result, ref, rtol=1e-5, atol=1e-6), (result, ref)

    print("KERNEL_OK")
</pallas_src>

<mosaic_0001>
module attributes {stable_mosaic.version = 11 : i64} {
  func.func @_entropy_kernel(%arg0: i32, %arg1: i32, %arg2: memref<16x128xf32, #tpu.memory_space<vmem>>, %arg3: memref<8x128xf32, #tpu.memory_space<vmem>>) attributes {dimension_semantics = [#tpu.dimension_semantics<parallel>, #tpu.dimension_semantics<arbitrary>], iteration_bounds = array<i64: 1, 1>, scalar_prefetch = 0 : i64, scratch_operands = 0 : i64, tpu.core_type = #tpu.core_type<tc>, window_params = [{transform_indices = @transform_0, window_bounds = array<i64: 16, 128>}, {transform_indices = @transform_1, window_bounds = array<i64: 8, 128>}]} {
    %c0_i32 = arith.constant 0 : i32
    %0 = arith.cmpi eq, %arg1, %c0_i32 : i32
    %1 = arith.extui %0 : i1 to i32
    %c0_i32_0 = arith.constant 0 : i32
    %2 = arith.cmpi ne, %1, %c0_i32_0 : i32
    scf.if %2 {
      %cst = arith.constant 0.000000e+00 : f32
      %11 = vector.broadcast %cst : f32 to vector<8x128xf32>
      %c0 = arith.constant 0 : index
      %c0_5 = arith.constant 0 : index
      %12 = vector.load %arg3[%c0, %c0_5] : memref<8x128xf32, #tpu.memory_space<vmem>>, vector<8x128xf32>
      tpu.vector_store %arg3[%c0, %c0_5], %11 {strides = array<i32>} : memref<8x128xf32, #tpu.memory_space<vmem>>, vector<8x128xf32>,
    } else {
    }
    %c1_i32 = arith.constant 1 : i32
    %3 = arith.muli %arg0, %c1_i32 : i32
    %4 = arith.addi %3, %arg1 : i32
    %c0_i32_1 = arith.constant 0 : i32
    %5 = arith.cmpi slt, %4, %c0_i32_1 : i32
    %6 = arith.extui %5 : i1 to i32
    %c0_i32_2 = arith.constant 0 : i32
    %7 = arith.cmpi ne, %6, %c0_i32_2 : i32
    scf.if %7 {
      %c0 = arith.constant 0 : index
      %c0_5 = arith.constant 0 : index
      %11 = vector.load %arg2[%c0, %c0_5] : memref<16x128xf32, #tpu.memory_space<vmem>>, vector<16x128xf32>
      %cst = arith.constant 9.99999993E-9 : f32
      %12 = vector.broadcast %cst : f32 to vector<16x128xf32>
      %13 = arith.addf %11, %12 : vector<16x128xf32>
      %c0_6 = arith.constant 0 : index
      %c0_7 = arith.constant 0 : index
      %14 = vector.load %arg3[%c0_6, %c0_7] : memref<8x128xf32, #tpu.memory_space<vmem>>, vector<8x128xf32>
      %15 = math.log %13 : vector<16x128xf32>
      %16 = arith.mulf %13, %15 : vector<16x128xf32>
      %17 = vector.shape_cast %16 : vector<16x128xf32> to vector<2x8x128xf32>
      %cst_8 = arith.constant dense<0.000000e+00> : vector<8x128xf32>
      %18 = vector.multi_reduction <add>, %17, %cst_8 [0] : vector<2x8x128xf32> to vector<8x128xf32>
      %19 = arith.addf %14, %18 : vector<8x128xf32>
      %c0_9 = arith.constant 0 : index
      %c0_10 = arith.constant 0 : index
      %20 = vector.load %arg3[%c0_9, %c0_10] : memref<8x128xf32, #tpu.memory_space<vmem>>, vector<8x128xf32>
      tpu.vector_store %arg3[%c0_9, %c0_10], %19 {strides = array<i32>} : memref<8x128xf32, #tpu.memory_space<vmem>>, vector<8x128xf32>,
    } else {
    }
    %c0_i32_3 = arith.constant 0 : i32
    %8 = arith.cmpi eq, %4, %c0_i32_3 : i32
    %9 = arith.extui %8 : i1 to i32
    %c0_i32_4 = arith.constant 0 : i32
    %10 = arith.cmpi ne, %9, %c0_i32_4 : i32
    scf.if %10 {
      %c0 = arith.constant 0 : index
      %c0_5 = arith.constant 0 : index
      %11 = vector.load %arg2[%c0, %c0_5] : memref<16x128xf32, #tpu.memory_space<vmem>>, vector<16x128xf32>
      %cst = arith.constant 9.99999993E-9 : f32
      %12 = vector.broadcast %cst : f32 to vector<16x128xf32>
      %13 = arith.addf %11, %12 : vector<16x128xf32>
      %14 = math.log %13 : vector<16x128xf32>
      %15 = arith.mulf %13, %14 : vector<16x128xf32>
      %16 = tpu.iota {dimensions = array<i32: 0>} : vector<16x128xi32>
      %17 = tpu.iota {dimensions = array<i32: 1>} : vector<16x128xi32>
      %c16_i32 = arith.constant 16 : i32
      %18 = vector.broadcast %c16_i32 : i32 to vector<16x128xi32>
      %19 = arith.cmpi slt, %16, %18 : vector<16x128xi32>
      %c16_i32_6 = arith.constant 16 : i32
      %20 = vector.broadcast %c16_i32_6 : i32 to vector<16x128xi32>
      %21 = arith.cmpi eq, %16, %20 : vector<16x128xi32>
      %c0_i32_7 = arith.constant 0 : i32
      %22 = vector.broadcast %c0_i32_7 : i32 to vector<16x128xi32>
      %23 = arith.cmpi slt, %17, %22 : vector<16x128xi32>
      %24 = arith.andi %21, %23 : vector<16x128xi1>
      %25 = arith.ori %19, %24 : vector<16x128xi1>
      %c0_8 = arith.constant 0 : index
      %c0_9 = arith.constant 0 : index
      %26 = vector.load %arg3[%c0_8, %c0_9] : memref<8x128xf32, #tpu.memory_space<vmem>>, vector<8x128xf32>
      %cst_10 = arith.constant 0.000000e+00 : f32
      %27 = vector.broadcast %cst_10 : f32 to vector<16x128xf32>
      %28 = arith.select %25, %15, %27 : vector<16x128xi1>, vector<16x128xf32>
      %29 = vector.shape_cast %28 : vector<16x128xf32> to vector<2x8x128xf32>
      %cst_11 = arith.constant dense<0.000000e+00> : vector<8x128xf32>
      %30 = vector.multi_reduction <add>, %29, %cst_11 [0] : vector<2x8x128xf32> to vector<8x128xf32>
      %31 = arith.addf %26, %30 : vector<8x128xf32>
      %c0_12 = arith.constant 0 : index
      %c0_13 = arith.constant 0 : index
      %32 = vector.load %arg3[%c0_12, %c0_13] : memref<8x128xf32, #tpu.memory_space<vmem>>, vector<8x128xf32>
      tpu.vector_store %arg3[%c0_12, %c0_13], %31 {strides = array<i32>} : memref<8x128xf32, #tpu.memory_space<vmem>>, vector<8x128xf32>,
    } else {
    }
    return
  }
  func.func @transform_0(%arg0: i32, %arg1: i32) -> (i32, i32) {
    %c1_i32 = arith.constant 1 : i32
    %0 = arith.muli %arg0, %c1_i32 : i32
    %1 = arith.addi %0, %arg1 : i32
    %c0_i32 = arith.constant 0 : i32
    %2 = arith.minsi %1, %c0_i32 : i32
    %c0_i32_0 = arith.constant 0 : i32
    %c0_i32_1 = arith.constant 0 : i32
    return %2, %c0_i32_0 : i32, i32
  }
  func.func @transform_1(%arg0: i32, %arg1: i32) -> (i32, i32) {
    %c0_i32 = arith.constant 0 : i32
    %c0_i32_0 = arith.constant 0 : i32
    return %arg0, %c0_i32 : i32, i32
  }
}

</mosaic_0001>

<bundles_post_ra>
// kernel: tpu_custom_call.1
= control target key start
LH: loop header
LB: loop body
LE: loop exit
PB: predicated region body
PF: predicated region fallthrough
CT: control target
= control target key end

     0   :  { %6 = vsyncpa [#allocation3], 0  ;;  %s203_s0 = inlined_call_operand.hbm [shape: f32[16,128], index: 0, kind: input, shape index: {}]   ;;  %s204_s1 = inlined_call_operand.hbm [shape: f32[8,128], index: 1, kind: output, shape index: {}]  }
   0x1   :  { %7 = vsyncpa [#allocation4], 0  ;;  %s165_s6 = smov [#allocation2]   ;;  %s117_s10 = scalar_lea.hbm %s203_s0, 256 }
   0x2   :  { %s19_s7 = sshll.u32 %s165_s6, 4  ;;  %p118_p0 = scmp.ne.s32.totalorder %s203_s0, %s117_s10  ;;  %s20_s7 = int_to_ptr.vmem [resolvable:$true] %s19_s7 }
   0x3   :  { %p121_p1 = scmp.lt.u32.totalorder %s117_s10, %s203_s0 }
   0x5   :  { %p123_p2 = pnand %p121_p1, %p118_p0 }
   0x7   :  { %126 = shalt.err (!%p123_p2)
}
   0x8   :  { %s127_s15 = scalar_lea.vmem %s20_s7, 256  ;;  %p132_p4 = scmp.lt.s32.totalorder %s20_s7, %s20_s7 }
   0x9   :  { %p128_p3 = scmp.ne.s32.totalorder %s20_s7, %s127_s15  ;;  %p133_p5 = scmp.lt.s32.totalorder %s127_s15, %s127_s15 }
   0xb   :  { %p134_p6 = por %p133_p5, %p132_p4 }
   0xd   :  { %p135_p7 = pnand %p134_p6, %p128_p3 }
   0xf   :  { %138 = shalt.err (!%p135_p7)
}
  0x10   :  { %s166_s16 = smov 128   ;;  %s167_s17 = smov 8  }
  0x11   :  { %25 = dma.hbm_to_vmem [thread:$0]  %s203_s0, 256, %s20_s7, [#allocation3], %s166_s16, %s166_s16, %s167_s17  }
  0x12   :  { %161 = dma.done.wait [#allocation3], 256  }
  0x13   :  { %162 = vsyncadd [#allocation3], 4294967040  ;;  %v61_v0 = vld [vmem:[#allocation2] sm:$0xff]  ;;  %v62_v1 = vld [vmem:[#allocation2 + $0x8] sm:$0xff]  ;;  %s168_s20 = smov [#allocation5]  }
  0x14   :  { %v63_v2 = vadd.f32 1e-08, %v61_v0  ;;  %v64_v3 = vadd.f32 1e-08, %v62_v1  ;;  %s97_s21 = sshll.u32 %s168_s20, 4  ;;  %s98_s21 = int_to_ptr.vmem [resolvable:$true] %s97_s21 }
  0x15   :  { %s139_s0 = scalar_lea.vmem %s98_s21, 128  ;;  %p144_p9 = scmp.lt.s32.totalorder %s98_s21, %s98_s21 }
  0x16   :  { %113 = vlog2.f32 %v63_v2  ;;  %p140_p8 = scmp.ne.s32.totalorder %s98_s21, %s139_s0  ;;  %p145_p10 = scmp.lt.s32.totalorder %s139_s0, %s139_s0 }
  0x17   :  { %115 = vlog2.f32 %v64_v3 }
  0x18   :  { %p146_p11 = por %p145_p10, %p144_p9 }
  0x1a   :  { %p147_p12 = pnand %p146_p11, %p140_p8 }
  0x20   :  { %v114_v4 = vpop.eup %113 }
  0x21   :  { %v116_v5 = vpop.eup %115  ;;  %v66_v6 = vmul.f32 0.6931472, %v114_v4 }
  0x22   :  { %v68_v7 = vmul.f32 0.6931472, %v116_v5 }
  0x23   :  { %v69_v8 = vmul.f32 %v66_v6, %v63_v2 }
  0x24   :  { %v70_v9 = vmul.f32 %v68_v7, %v64_v3 }
  0x26   :  { %v88_v10 = vadd.f32 %v70_v9, %v69_v8 }
  0x28   :  { %90 = vst [vmem:[#allocation5] sm:$0xff] %v88_v10 }
  0x29   :  { %150 = shalt.err (!%p147_p12)
}
  0x2a   :  { %s151_s24 = scalar_lea.hbm %s204_s1, 128 }
  0x2b   :  { %p152_p13 = scmp.ne.s32.totalorder %s204_s1, %s151_s24  ;;  %p155_p0 = scmp.lt.u32.totalorder %s151_s24, %s204_s1 }
  0x2d   :  { %p157_p1 = pnand %p155_p0, %p152_p13 }
  0x2f   :  { %160 = shalt.err (!%p157_p1)
}
  0x30   :  { %100 = dma.vmem_to_hbm [thread:$0]  %s98_s21, 128, %s204_s1, [#allocation4]  }
  0x31   :  { %163 = dma.done.wait [#allocation4], 128  }
  0x32   :  { %164 = vsyncadd [#allocation4], 4294967168 }
  0x33   :  { %104 = vsyncpa [#allocation3], 1 }
  0x34   :  { %105 = vsyncpa [#allocation4], 1 }

</bundles_post_ra>
